<compile_context>
chip_gen: v7x
topology: tpu7x:2x2x1
jax: 0.10.0
libtpu: 0.0.40
codegen_flags: <defaults>
</compile_context>

<pallas_src>
import jax
import jax.numpy as jnp
from jax.experimental import pallas as pl
from jax.experimental.pallas import tpu as pltpu


def kcfg_denoise(x, sigma, uncond, cond, cond_scale, w1, w2):
    B, C, H, W = x.shape
    HW = H * W
    T, E = uncond.shape[1], uncond.shape[2]
    BC = B * C

    # Layout plumbing in the wrapper (no compute hoisting of the big tensors):
    x_flat = x.reshape(BC, HW).astype(jnp.float32)                  # [B*C, HW] -> (8,128)-tiled
    cond_all = (jnp.concatenate([uncond, cond], axis=0)             # == torch.cat([uncond, cond])
                .reshape(2 * B * T, E).astype(jnp.float32))         # [2B*T, E] (2D, sublane-aligned groups of T)
    w_bd = jnp.kron(jnp.eye(B, dtype=jnp.float32),
                    w1.astype(jnp.float32))                         # [B*C, B*C] block-diag 1x1-conv weight
    cs = jnp.asarray([cond_scale], dtype=jnp.float32)
    sigma = sigma.astype(jnp.float32)
    w2 = w2.astype(jnp.float32)
    inv_T = 1.0 / float(T)

    def kernel(sigma_ref, cscale_ref, x_ref, cond_ref, wbd_ref, w2_ref, o_ref):
        cscale = cscale_ref[0]                                      # SMEM scalar
        w2v = w2_ref[...]                                           # [C, E]

        # Per-row sigma scale 1/(sigma_b^2 + 1): rows b*C .. b*C+C-1 share sigma[b].
        # Built from SMEM scalars; B is static and tiny, loop is unrolled at trace time.
        s_blocks = []
        for b in range(B):
            sb = sigma_ref[b]
            s_blocks.append(jnp.full((C, 1), 1.0 / (sb * sb + 1.0), jnp.float32))
        s_col = jnp.concatenate(s_blocks, axis=0)                   # [B*C, 1]

        # Channel mix (1x1 conv) for ALL batches in one matmul; the sigma scale is
        # folded into the tiny weight instead of a full-tile multiply.
        w_eff = wbd_ref[...] * s_col                                # [B*C, B*C]
        h = jnp.dot(w_eff, x_ref[...],
                    preferred_element_type=jnp.float32)             # [B*C, HW]

        # Conditioning path: pool over T (sublane reduce on static, aligned slices),
        # CFG-combine the pooled embeddings, then project once with w2 -> one
        # combined per-channel bias column.
        bias_cols = []
        for b in range(B):                                          # unrolled, B static
            u_pool = jnp.sum(cond_ref[pl.ds(b * T, T), :],
                             axis=0, keepdims=True) * inv_T         # [1, E]
            c_pool = jnp.sum(cond_ref[pl.ds((B + b) * T, T), :],
                             axis=0, keepdims=True) * inv_T         # [1, E]
            pool_cfg = u_pool + (c_pool - u_pool) * cscale          # [1, E]
            bias_cols.append(
                jnp.sum(w2v * pool_cfg, axis=1, keepdims=True))     # [C, 1]
        bias_col = jnp.concatenate(bias_cols, axis=0)               # [B*C, 1]

        # CFG combine already folded into bias_col:
        #   out = h*s + u_bias + (c_bias - u_bias)*cond_scale
        # -> single fused broadcast-add on the big tile, lane-dense unmasked store.
        o_ref[...] = h + bias_col

    out = pl.pallas_call(
        kernel,
        out_shape=jax.ShapeDtypeStruct((BC, HW), jnp.float32),
        grid_spec=pltpu.PrefetchScalarGridSpec(
            num_scalar_prefetch=2,                 # sigma (B,), cond_scale (1,) -> SMEM
            grid=(1,),                             # single step: no per-batch grid overhead
            in_specs=[
                pl.BlockSpec((BC, HW), lambda i, sig, csc: (0, 0)),          # x (dense 8x256)
                pl.BlockSpec((2 * B * T, E), lambda i, sig, csc: (0, 0)),    # [uncond; cond] flat
                pl.BlockSpec((BC, BC), lambda i, sig, csc: (0, 0)),          # block-diag w1
                pl.BlockSpec((C, E), lambda i, sig, csc: (0, 0)),            # w2
            ],
            out_specs=pl.BlockSpec((BC, HW), lambda i, sig, csc: (0, 0)),
        ),
        compiler_params=pltpu.CompilerParams(
            dimension_semantics=("arbitrary",)),
    )(sigma, cs, x_flat, cond_all, w_bd, w2)
    return out.reshape(B, C, H, W)


def ref_forward(x, sigma, uncond, cond, cond_scale, w1, w2):
    """Pure-JAX reference mirroring KCFGDenoiser.forward literally
    (cat -> inner_model -> chunk -> combine)."""
    def inner(x_in, sigma_in, cond_in):
        h = jnp.einsum("dc,bchw->bdhw", w1, x_in)
        s = 1.0 / (sigma_in ** 2 + 1.0)
        pooled = jnp.mean(cond_in, axis=1)                 # [2B, E]
        bias = jnp.einsum("ce,be->bc", w2, pooled)         # [2B, C]
        return h * s[:, None, None, None] + bias[:, :, None, None]

    x_in = jnp.concatenate([x, x])
    sigma_in = jnp.concatenate([sigma, sigma])
    cond_in = jnp.concatenate([uncond, cond])
    out = inner(x_in, sigma_in, cond_in)
    u, c = jnp.split(out, 2)
    return u + (c - u) * cond_scale


if __name__ == "__main__":
    B, C, H, W = 2, 4, 16, 16   # latent: batch=2, channels=4, spatial=16
    T, E = 8, 32                # conditioning: seq=8, embed=32

    key = jax.random.PRNGKey(0)
    k0, k1, k2, k3, k4, k5 = jax.random.split(key, 6)
    x = jax.random.normal(k0, (B, C, H, W), jnp.float32)
    sigma = jax.random.uniform(k1, (B,), jnp.float32, 0.5, 2.0)
    uncond = jax.random.normal(k2, (B, T, E), jnp.float32)
    cond = jax.random.normal(k3, (B, T, E), jnp.float32)
    cond_scale = 7.5

    # Deterministic synthetic inner-model parameters.
    w1 = 0.1 * jax.random.normal(k4, (C, C), jnp.float32)   # 1x1 conv [out, in]
    w2 = 0.1 * jax.random.normal(k5, (C, E), jnp.float32)   # cond projection

    # TODO(synk): the real inner_model is an external diffusion UNet; a synthetic
    # channel-mix + sigma-scale + pooled-cond-bias stands in for it here.

    out = kcfg_denoise(x, sigma, uncond, cond, cond_scale, w1, w2)
    jax.block_until_ready(out)

    ref = ref_forward(x, sigma, uncond, cond, cond_scale, w1, w2)
    assert out.shape == (B, C, H, W)
    assert jnp.allclose(out, ref, atol=1e-4, rtol=1e-4), "mismatch vs reference"

    print("KERNEL_OK")
</pallas_src>

<mosaic_0001>
module attributes {stable_mosaic.version = 11 : i64} {
  func.func @kernel(%arg0: i32, %arg1: memref<2xf32, #tpu.memory_space<smem>>, %arg2: memref<1xf32, #tpu.memory_space<smem>>, %arg3: memref<8x256xf32, #tpu.memory_space<vmem>>, %arg4: memref<32x32xf32, #tpu.memory_space<vmem>>, %arg5: memref<8x8xf32, #tpu.memory_space<vmem>>, %arg6: memref<4x32xf32, #tpu.memory_space<vmem>>, %arg7: memref<8x256xf32, #tpu.memory_space<vmem>>) attributes {dimension_semantics = [#tpu.dimension_semantics<arbitrary>], iteration_bounds = array<i64: 1>, scalar_prefetch = 2 : i64, scratch_operands = 0 : i64, tpu.core_type = #tpu.core_type<tc>, window_params = [{pipeline_mode = #tpu.pipeline_mode<synchronous>, transform_indices = @transform_0, window_bounds = array<i64: 8, 256>}, {pipeline_mode = #tpu.pipeline_mode<synchronous>, transform_indices = @transform_1, window_bounds = array<i64: 32, 32>}, {pipeline_mode = #tpu.pipeline_mode<synchronous>, transform_indices = @transform_2, window_bounds = array<i64: 8, 8>}, {pipeline_mode = #tpu.pipeline_mode<synchronous>, transform_indices = @transform_3, window_bounds = array<i64: 4, 32>}, {pipeline_mode = #tpu.pipeline_mode<synchronous>, transform_indices = @transform_4, window_bounds = array<i64: 8, 256>}]} {
    %c0 = arith.constant 0 : index
    %0 = memref.load %arg2[%c0] : memref<1xf32, #tpu.memory_space<smem>>
    %c0_0 = arith.constant 0 : index
    %c0_1 = arith.constant 0 : index
    %1 = vector.load %arg6[%c0_0, %c0_1] : memref<4x32xf32, #tpu.memory_space<vmem>>, vector<4x32xf32>
    %c0_2 = arith.constant 0 : index
    %2 = memref.load %arg1[%c0_2] : memref<2xf32, #tpu.memory_space<smem>>
    %3 = arith.mulf %2, %2 : f32
    %cst = arith.constant 1.000000e+00 : f32
    %4 = arith.addf %3, %cst : f32
    %cst_3 = arith.constant 1.000000e+00 : f32
    %5 = arith.divf %cst_3, %4 : f32
    %6 = vector.broadcast %5 : f32 to vector<4x1xf32>
    %c1 = arith.constant 1 : index
    %7 = memref.load %arg1[%c1] : memref<2xf32, #tpu.memory_space<smem>>
    %8 = arith.mulf %7, %7 : f32
    %cst_4 = arith.constant 1.000000e+00 : f32
    %9 = arith.addf %8, %cst_4 : f32
    %cst_5 = arith.constant 1.000000e+00 : f32
    %10 = arith.divf %cst_5, %9 : f32
    %11 = vector.broadcast %10 : f32 to vector<4x1xf32>
    %12 = tpu.concatenate %6, %11 in 0 : vector<4x1xf32>, vector<4x1xf32> -> vector<8x1xf32>
    %c0_6 = arith.constant 0 : index
    %c0_7 = arith.constant 0 : index
    %13 = vector.load %arg5[%c0_6, %c0_7] : memref<8x8xf32, #tpu.memory_space<vmem>>, vector<8x8xf32>
    %14 = vector.broadcast %12 : vector<8x1xf32> to vector<8x8xf32>
    %15 = arith.mulf %13, %14 : vector<8x8xf32>
    %c0_8 = arith.constant 0 : index
    %c0_9 = arith.constant 0 : index
    %16 = vector.load %arg3[%c0_8, %c0_9] : memref<8x256xf32, #tpu.memory_space<vmem>>, vector<8x256xf32>
    %cst_10 = arith.constant dense<0.000000e+00> : vector<8x256xf32>
    %17 = tpu.matmul %15, %16, %cst_10 {dimension_numbers = #tpu.dot_dimension_numbers<[1], [0], [0], [1], [0, 0, 1, 1], [], []>} : vector<8x8xf32>, vector<8x256xf32>, vector<8x256xf32> -> vector<8x256xf32>
    %c0_11 = arith.constant 0 : index
    %c0_12 = arith.constant 0 : index
    %18 = vector.load %arg4[%c0_11, %c0_12] : memref<32x32xf32, #tpu.memory_space<vmem>>, vector<8x32xf32>
    %cst_13 = arith.constant dense<0.000000e+00> : vector<32xf32>
    %19 = vector.multi_reduction <add>, %18, %cst_13 [0] : vector<8x32xf32> to vector<32xf32>
    %20 = vector.shape_cast %19 : vector<32xf32> to vector<1x32xf32>
    %cst_14 = arith.constant 1.250000e-01 : f32
    %21 = vector.broadcast %cst_14 : f32 to vector<1x32xf32>
    %22 = arith.mulf %20, %21 : vector<1x32xf32>
    %c16 = arith.constant 16 : index
    %c0_15 = arith.constant 0 : index
    %23 = vector.load %arg4[%c16, %c0_15] : memref<32x32xf32, #tpu.memory_space<vmem>>, vector<8x32xf32>
    %cst_16 = arith.constant dense<0.000000e+00> : vector<32xf32>
    %24 = vector.multi_reduction <add>, %23, %cst_16 [0] : vector<8x32xf32> to vector<32xf32>
    %25 = vector.shape_cast %24 : vector<32xf32> to vector<1x32xf32>
    %cst_17 = arith.constant 1.250000e-01 : f32
    %26 = vector.broadcast %cst_17 : f32 to vector<1x32xf32>
    %27 = arith.mulf %25, %26 : vector<1x32xf32>
    %28 = arith.subf %27, %22 : vector<1x32xf32>
    %29 = vector.broadcast %0 : f32 to vector<1x32xf32>
    %30 = arith.mulf %28, %29 : vector<1x32xf32>
    %31 = arith.addf %22, %30 : vector<1x32xf32>
    %32 = vector.broadcast %31 : vector<1x32xf32> to vector<4x32xf32>
    %33 = arith.mulf %1, %32 : vector<4x32xf32>
    %cst_18 = arith.constant dense<0.000000e+00> : vector<4xf32>
    %34 = vector.multi_reduction <add>, %33, %cst_18 [1] : vector<4x32xf32> to vector<4xf32>
    %35 = vector.shape_cast %34 : vector<4xf32> to vector<4x1xf32>
    %c8 = arith.constant 8 : index
    %c0_19 = arith.constant 0 : index
    %36 = vector.load %arg4[%c8, %c0_19] : memref<32x32xf32, #tpu.memory_space<vmem>>, vector<8x32xf32>
    %cst_20 = arith.constant dense<0.000000e+00> : vector<32xf32>
    %37 = vector.multi_reduction <add>, %36, %cst_20 [0] : vector<8x32xf32> to vector<32xf32>
    %38 = vector.shape_cast %37 : vector<32xf32> to vector<1x32xf32>
    %cst_21 = arith.constant 1.250000e-01 : f32
    %39 = vector.broadcast %cst_21 : f32 to vector<1x32xf32>
    %40 = arith.mulf %38, %39 : vector<1x32xf32>
    %c24 = arith.constant 24 : index
    %c0_22 = arith.constant 0 : index
    %41 = vector.load %arg4[%c24, %c0_22] : memref<32x32xf32, #tpu.memory_space<vmem>>, vector<8x32xf32>
    %cst_23 = arith.constant dense<0.000000e+00> : vector<32xf32>
    %42 = vector.multi_reduction <add>, %41, %cst_23 [0] : vector<8x32xf32> to vector<32xf32>
    %43 = vector.shape_cast %42 : vector<32xf32> to vector<1x32xf32>
    %cst_24 = arith.constant 1.250000e-01 : f32
    %44 = vector.broadcast %cst_24 : f32 to vector<1x32xf32>
    %45 = arith.mulf %43, %44 : vector<1x32xf32>
    %46 = arith.subf %45, %40 : vector<1x32xf32>
    %47 = vector.broadcast %0 : f32 to vector<1x32xf32>
    %48 = arith.mulf %46, %47 : vector<1x32xf32>
    %49 = arith.addf %40, %48 : vector<1x32xf32>
    %50 = vector.broadcast %49 : vector<1x32xf32> to vector<4x32xf32>
    %51 = arith.mulf %1, %50 : vector<4x32xf32>
    %cst_25 = arith.constant dense<0.000000e+00> : vector<4xf32>
    %52 = vector.multi_reduction <add>, %51, %cst_25 [1] : vector<4x32xf32> to vector<4xf32>
    %53 = vector.shape_cast %52 : vector<4xf32> to vector<4x1xf32>
    %54 = tpu.concatenate %35, %53 in 0 : vector<4x1xf32>, vector<4x1xf32> -> vector<8x1xf32>
    %55 = vector.broadcast %54 : vector<8x1xf32> to vector<8x256xf32>
    %56 = arith.addf %17, %55 : vector<8x256xf32>
    %c0_26 = arith.constant 0 : index
    %c0_27 = arith.constant 0 : index
    %57 = vector.load %arg7[%c0_26, %c0_27] : memref<8x256xf32, #tpu.memory_space<vmem>>, vector<8x256xf32>
    tpu.vector_store %arg7[%c0_26, %c0_27], %56 {strides = array<i32>} : memref<8x256xf32, #tpu.memory_space<vmem>>, vector<8x256xf32>,
    return
  }
  func.func @transform_0(%arg0: i32, %arg1: memref<2xf32, #tpu.memory_space<smem>>, %arg2: memref<1xf32, #tpu.memory_space<smem>>) -> (i32, i32) {
    %c0_i32 = arith.constant 0 : i32
    %c0_i32_0 = arith.constant 0 : i32
    %c0_i32_1 = arith.constant 0 : i32
    return %c0_i32, %c0_i32_0 : i32, i32
  }
  func.func @transform_1(%arg0: i32, %arg1: memref<2xf32, #tpu.memory_space<smem>>, %arg2: memref<1xf32, #tpu.memory_space<smem>>) -> (i32, i32) {
    %c0_i32 = arith.constant 0 : i32
    %c0_i32_0 = arith.constant 0 : i32
    %c0_i32_1 = arith.constant 0 : i32
    return %c0_i32, %c0_i32_0 : i32, i32
  }
  func.func @transform_2(%arg0: i32, %arg1: memref<2xf32, #tpu.memory_space<smem>>, %arg2: memref<1xf32, #tpu.memory_space<smem>>) -> (i32, i32) {
    %c0_i32 = arith.constant 0 : i32
    %c0_i32_0 = arith.constant 0 : i32
    %c0_i32_1 = arith.constant 0 : i32
    return %c0_i32, %c0_i32_0 : i32, i32
  }
  func.func @transform_3(%arg0: i32, %arg1: memref<2xf32, #tpu.memory_space<smem>>, %arg2: memref<1xf32, #tpu.memory_space<smem>>) -> (i32, i32) {
    %c0_i32 = arith.constant 0 : i32
    %c0_i32_0 = arith.constant 0 : i32
    %c0_i32_1 = arith.constant 0 : i32
    return %c0_i32, %c0_i32_0 : i32, i32
  }
  func.func @transform_4(%arg0: i32, %arg1: memref<2xf32, #tpu.memory_space<smem>>, %arg2: memref<1xf32, #tpu.memory_space<smem>>) -> (i32, i32) {
    %c0_i32 = arith.constant 0 : i32
    %c0_i32_0 = arith.constant 0 : i32
    %c0_i32_1 = arith.constant 0 : i32
    return %c0_i32, %c0_i32_0 : i32, i32
  }
}

</mosaic_0001>

<bundles_post_ra>
// kernel: tpu_custom_call.1
= control target key start
LH: loop header
LB: loop body
LE: loop exit
PB: predicated region body
PF: predicated region fallthrough
CT: control target
= control target key end

     0   :  { %s441_s0 = inlined_call_operand.vmem [shape: f32[2], index: 0, kind: input, shape index: {}]   ;;  %s442_s1 = inlined_call_operand.<no memory space> [shape: f32[1], index: 1, kind: input, shape index: {}]   ;;  %s443_s2 = inlined_call_operand.hbm [shape: f32[8,256], index: 2, kind: input, shape index: {}]   ;;  %s444_s3 = inlined_call_operand.hbm [shape: f32[32,32], index: 3, kind: input, shape index: {}]   ;;  %s445_s4 = inlined_call_operand.vmem [shape: f32[8,8], index: 4, kind: input, shape index: {}]   ;;  %s446_s5 = inlined_call_operand.vmem [shape: f32[4,32], index: 5, kind: input, shape index: {}]   ;;  %s447_s6 = inlined_call_operand.hbm [shape: f32[8,256], index: 6, kind: output, shape index: {}]  }
   0x1   :  { %s11_s23 = sshll.u32 %s441_s0, 4  ;;  %s12_s23 = int_to_ptr.vmem [resolvable:$true] %s11_s23 }
   0x2   :  { %s255_s24 = scalar_lea.vmem %s12_s23, 16  ;;  %p260_p1 = scmp.lt.s32.totalorder %s12_s23, %s12_s23 }
   0x3   :  { %p256_p0 = scmp.ne.s32.totalorder %s12_s23, %s255_s24  ;;  %p261_p2 = scmp.lt.s32.totalorder %s255_s24, %s255_s24 }
   0x5   :  { %p262_p3 = por %p261_p2, %p260_p1 }
   0x7   :  { %p263_p4 = pnand %p262_p3, %p256_p0 }
   0x9   :  { %266 = shalt.err (!%p263_p4)  }
   0xa   :  { %s341_s25 = smov [#allocation3]  }
   0xb   :  { %14 = dma.vmem_to_smem %s12_s23, 16, %s341_s25, [#allocation2] }
   0xc   :  { %333 = dma.done.wait [#allocation2], 16 }
   0xd   :  { %334 = vsyncadd [#allocation2], 4294967280 }
   0xe   :  { %17 = sfence }
   0xf   :  { %18 = vsyncpa [#allocation6], 0 }
  0x10   :  { %19 = vsyncpa [#allocation9], 0 }
  0x11   :  { %20 = vsyncpa [#allocation7], 0  ;;  %s342_s26 = smov [#allocation5]   ;;  %s343_s28 = smov [#allocation8]  }
  0x12   :  { %s27_s27 = sshll.u32 %s342_s26, 4  ;;  %s36_s0 = sshll.u32 %s343_s28, 4  ;;  %s28_s27 = int_to_ptr.vmem [resolvable:$true] %s27_s27  ;;  %s387_s0 = int_to_ptr.vmem [resolvable:$true] %s36_s0 }
  0x13   :  { %s267_s7 = scalar_lea.hbm %s443_s2, 256 }
  0x14   :  { %p268_p5 = scmp.ne.s32.totalorder %s443_s2, %s267_s7  ;;  %p271_p6 = scmp.lt.u32.totalorder %s267_s7, %s443_s2 }
  0x16   :  { %p273_p7 = pnand %p271_p6, %p268_p5 }
  0x18   :  { %276 = shalt.err (!%p273_p7)
}
  0x19   :  { %s277_s12 = scalar_lea.vmem %s28_s27, 256  ;;  %p282_p9 = scmp.lt.s32.totalorder %s28_s27, %s28_s27 }
  0x1a   :  { %p278_p8 = scmp.ne.s32.totalorder %s28_s27, %s277_s12  ;;  %p283_p10 = scmp.lt.s32.totalorder %s277_s12, %s277_s12 }
  0x1c   :  { %p284_p11 = por %p283_p10, %p282_p9 }
  0x1e   :  { %p285_p12 = pnand %p284_p11, %p278_p8 }
  0x20   :  { %288 = shalt.err (!%p285_p12)
}
  0x21   :  { %30 = dma.hbm_to_vmem [thread:$0]  %s443_s2, 256, %s28_s27, [#allocation6]  }
  0x22   :  { %s289_s17 = scalar_lea.hbm %s444_s3, 512 }
  0x23   :  { %p290_p13 = scmp.ne.s32.totalorder %s444_s3, %s289_s17  ;;  %p293_p0 = scmp.lt.u32.totalorder %s289_s17, %s444_s3 }
  0x25   :  { %p295_p1 = pnand %p293_p0, %p290_p13 }
  0x27   :  { %298 = shalt.err (!%p295_p1)
}
  0x28   :  { %s299_s22 = scalar_lea.vmem %s387_s0, 512  ;;  %p304_p3 = scmp.lt.s32.totalorder %s387_s0, %s387_s0 }
  0x29   :  { %p300_p2 = scmp.ne.s32.totalorder %s387_s0, %s299_s22  ;;  %p305_p4 = scmp.lt.s32.totalorder %s299_s22, %s299_s22 }
  0x2b   :  { %p306_p5 = por %p305_p4, %p304_p3 }
  0x2d   :  { %p307_p6 = pnand %p306_p5, %p300_p2 }
  0x2f   :  { %310 = shalt.err (!%p307_p6)
}
  0x30   :  { %s344_s2 = smov 128   ;;  %s345_s23 = smov 8  }
  0x31   :  { %42 = dma.hbm_to_vmem [thread:$0]  %s444_s3, 512, %s387_s0, [#allocation9], %s344_s2, %s344_s2, %s345_s23  }
  0x32   :  { %335 = dma.done.wait [#allocation6], 256  }
  0x33   :  { %336 = vsyncadd [#allocation6], 4294967040 }
  0x34   :  { %337 = dma.done.wait [#allocation9], 512  }
  0x35   :  { %338 = vsyncadd [#allocation9], 4294966784  ;;  %s55_s26 = sld [smem:[#allocation3]]  ;;  %s235_s27 = sld [smem:[#allocation3 + $0x1]]  ;;  %v346_v0 = vmov 0   ;;  %vm81_vm0 = vcmask 261120   ;;  %v100_v38 = vstv %s442_s1 }
  0x36   :  { %249 = vset.pattern.permute.xlu0 %v346_v0  ;;  %250 = vset.pattern.permute.xlu1 %v346_v0  ;;  %v108_v1 = vld [vmem:[#allocation8 + $0x8] sm:$0xff]  ;;  %v117_v2 = vld [vmem:[#allocation8 + $0x18] sm:$0xff]  ;;  %v80_v5 = vld [vmem:[#allocation8] sm:$0xff]  ;;  %vm104_vm1 = vcmask 257024   ;;  %vm69_vm2 = vcmask 1043456   ;;  %v347_v58 = vmov 0.0  }
  0x37   :  { %v109_v3 = vsel %vm81_vm0, %v108_v1, 0.0  ;;  %v118_v4 = vsel %vm81_vm0, %v117_v2, 0.0  ;;  %v90_v6 = vld [vmem:[#allocation8 + $0x10] sm:$0xff]  ;;  %v82_v9 = vsel %vm81_vm0, %v80_v5, 0.0  ;;  %v79_v56 = vld [vmem:[#allocation5 + $0x8] sm:$0xff]  ;;  %210 = vmatprep.mubr.f32.mxu0 %v347_v58  ;;  %vm142_vm3 = vcmask 64512  }
  0x38   :  { %v110_v7 = vrot.slane %v109_v3, 4  ;;  %v119_v8 = vrot.slane %v118_v4, 4  ;;  %v91_v10 = vsel %vm81_vm0, %v90_v6, 0.0  ;;  %v83_v11 = vrot.slane %v82_v9, 4  ;;  %v54_v45 = vld [vmem:[%s446_s5] sm:$0xf]  ;;  %146 = vmatprep.subr.mxu0 %v79_v56 }
  0x39   :  { %v92_v12 = vrot.slane %v91_v10, 4  ;;  %v78_v57 = vld [vmem:[#allocation5] sm:$0xff]  ;;  %s348_s12 = smov [#allocation10]  }
  0x3a   :  { %v111_v14 = vadd.f32 %v110_v7, %v109_v3  ;;  %v120_v15 = vadd.f32 %v119_v8, %v118_v4  ;;  %v84_v17 = vadd.f32 %v83_v11, %v82_v9  ;;  %147 = vmatpush1.msra.mxu0 %v78_v57  ;;  %v71_v59 = vld [vmem:[%s445_s4] sm:$0xff]  ;;  %s225_s13 = sshll.u32 %s348_s12, 4  ;;  %s226_s13 = int_to_ptr.vmem [resolvable:$true] %s225_s13 }
  0x3b   :  { %s56_s28 = smul.f32 %s55_s26, %s55_s26  ;;  %v93_v18 = vadd.f32 %v92_v12, %v91_v10  ;;  %s311_s4 = scalar_lea.vmem %s226_s13, 256 }
  0x3c   :  { %s63_s29 = smul.f32 %s235_s27, %s235_s27  ;;  %v112_v19 = vrot.slane %v111_v14, 2  ;;  %v121_v20 = vrot.slane %v120_v15, 2  ;;  %v85_v21 = vrot.slane %v84_v17, 2  ;;  %p312_p7 = scmp.ne.s32.totalorder %s226_s13, %s311_s4 }
  0x3d   :  { %s57_s30 = sadd.f32 1.0, %s56_s28  ;;  %v94_v22 = vrot.slane %v93_v18, 2  ;;  %p316_p8 = scmp.lt.s32.totalorder %s226_s13, %s226_s13 }
  0x3e   :  { %s64_s3 = sadd.f32 1.0, %s63_s29  ;;  %v113_v23 = vadd.f32 %v112_v19, %v111_v14  ;;  %v122_v24 = vadd.f32 %v121_v20, %v120_v15  ;;  %v86_v25 = vadd.f32 %v85_v21, %v84_v17  ;;  %p317_p9 = scmp.lt.s32.totalorder %s311_s4, %s311_s4 }
  0x3f   :  { %v58_v13 = vstv %s57_s30  ;;  %v95_v26 = vadd.f32 %v94_v22, %v93_v18 }
  0x40   :  { %251 = vrcp.f32 %v58_v13  ;;  %v65_v16 = vstv %s64_s3  ;;  %v114_v27 = vrot.slane %v113_v23, 1  ;;  %v123_v28 = vrot.slane %v122_v24, 1  ;;  %p318_p10 = por %p317_p9, %p316_p8 }
  0x41   :  { %253 = vrcp.f32 %v65_v16  ;;  %v87_v29 = vrot.slane %v86_v25, 1  ;;  %v96_v30 = vrot.slane %v95_v26, 1 }
  0x42   :  { %v115_v31 = vadd.f32 %v114_v27, %v113_v23  ;;  %v124_v32 = vadd.f32 %v123_v28, %v122_v24  ;;  %p319_p11 = pnand %p318_p10, %p312_p7 }
  0x43   :  { %v88_v33 = vadd.f32 %v87_v29, %v86_v25  ;;  %v97_v34 = vadd.f32 %v96_v30, %v95_v26 }
  0x44   :  { %v116_v35 = vmul.f32 0.125, %v115_v31  ;;  %v125_v36 = vmul.f32 0.125, %v124_v32 }
  0x45   :  { %v89_v39 = vmul.f32 0.125, %v88_v33  ;;  %v98_v40 = vmul.f32 0.125, %v97_v34 }
  0x46   :  { %v126_v42 = vsub.f32 %v125_v36, %v116_v35 }
  0x47   :  { %v99_v43 = vsub.f32 %v98_v40, %v89_v39 }
  0x48   :  { %v127_v44 = vmul.f32 %v126_v42, %v100_v38 }
  0x49   :  { %v101_v46 = vmul.f32 %v100_v38, %v99_v43 }
  0x4a   :  { %v252_v37 = vpop.eup %251  ;;  %v128_v47 = vadd.f32 %v127_v44, %v116_v35 }
  0x4b   :  { %v254_v41 = vpop.eup %253  ;;  %237 = vpush %v252_v37  ;;  %v102_v48 = vadd.f32 %v101_v46, %v89_v39 }
  0x4c   :  { %239 = vpush %v254_v41  ;;  %v129_v49 = vmul.f32 %v128_v47, %v54_v45 }
  0x4d   :  { %v103_v50 = vmul.f32 %v102_v48, %v54_v45 }
  0x4e   :  { %v130_v51 = vsel %vm104_vm1, %v129_v49, 0.0 }
  0x4f   :  { %v105_v52 = vsel %vm104_vm1, %v103_v50, 0.0 }
  0x50   :  { %106 = vadd.xlane.f32.xlu1 %v105_v52 }
  0x7c   :  { %s238_s1 = spop %237 }
  0x7d   :  { %v61_v53 = vstv %s238_s1  ;;  %s240_s10 = spop %239 }
  0x7e   :  { %v68_v54 = vstv %s240_s10 }
  0x7f   :  { %v70_v55 = vsel %vm69_vm2, %v61_v53, %v68_v54 }
  0x80   :  { %74 = vperm.xlu0 %249, %v70_v55  }
  0x9f   :  { %131 = vadd.xlane.f32.xlu0 %v130_v51 }
  0xdd   :  { %v107_v63 = vpop.xlane.xlu1 %106 }
  0xff   :  { %v75_v60 = vpop.permute.xlu0 %74 }
 0x100   :  { %v77_v61 = vmul.f32 %v75_v60, %v71_v59 }
 0x102   :  { %236 = vmatmul.mubr.msk.f32.vlgmr.msra.gmra.mrb[0].mxu0 %vm142_vm3, %v77_v61 }
 0x12c   :  { %v132_v62 = vpop.xlane.xlu0 %131 }
 0x12d   :  { %v134_v0 = vrot.slane %v132_v62, 4 }
 0x12f   :  { %v136_v1 = vsel %vm69_vm2, %v107_v63, %v134_v0 }
 0x130   :  { %139 = vperm.xlu1 %250, %v136_v1  }
 0x1af   :  { %v140_v2 = vpop.permute.xlu1 %139 }
 0x1d5   :  { %v212_v3 = vpop.f32.mrb[0].mxu0 }
 0x1d6   :  { %v213_v4 = vadd.f32 %v212_v3, %v140_v2  ;;  %v214_v5 = vpop.f32.mrb[1].mxu0 }
 0x1d7   :  { %v215_v6 = vadd.f32 %v214_v5, %v140_v2 }
 0x1d8   :  { %217 = vst [vmem:[#allocation10] sm:$0xff] %v213_v4 }
 0x1d9   :  { %218 = vst [vmem:[#allocation10 + $0x8] sm:$0xff] %v215_v6 }
 0x1da   :  { %322 = shalt.err (!%p319_p11)
}
 0x1db   :  { %s323_s16 = scalar_lea.hbm %s447_s6, 256 }
 0x1dc   :  { %p324_p12 = scmp.ne.s32.totalorder %s447_s6, %s323_s16  ;;  %p327_p13 = scmp.lt.u32.totalorder %s323_s16, %s447_s6 }
 0x1de   :  { %p329_p0 = pnand %p327_p13, %p324_p12 }
 0x1e0   :  { %332 = shalt.err (!%p329_p0)
}
 0x1e1   :  { %228 = dma.vmem_to_hbm [thread:$0]  %s226_s13, 256, %s447_s6, [#allocation7]  }
 0x1e2   :  { %339 = dma.done.wait [#allocation7], 256  }
 0x1e3   :  { %340 = vsyncadd [#allocation7], 4294967040 }
 0x1e4   :  { %232 = vsyncpa [#allocation6], 1 }
 0x1e5   :  { %233 = vsyncpa [#allocation9], 1 }
 0x1e6   :  { %234 = vsyncpa [#allocation7], 1 }

</bundles_post_ra>
